<compile_context>
chip_gen: v7x
topology: tpu7x:2x2x1
jax: 0.10.0
libtpu: 0.0.40
codegen_flags: <defaults>
</compile_context>

<pallas_src>
import jax
import jax.numpy as jnp
from jax.experimental import pallas as pl
from jax.experimental.pallas import tpu as pltpu

# ----------------------------- model config ---------------------------------
FIELD_DIMS   = [32, 10, 12, 7, 9]      # field 0 = token field
MULTIHOT_IDX = [1, 2]
ONEHOT_IDX   = [3, 4]
EMB_LENGTH   = 8
HIDDEN_UNITS = [32, 16]                # user-supplied hidden_units
VOCAB        = 50                      # pretrained word-embedding vocab size
WORD_EMB_DIM = FIELD_DIMS[0]

D_IN   = FIELD_DIMS[0] + (len(FIELD_DIMS) - 1) * EMB_LENGTH    # 64 deep features
D_ROWS = D_IN + 1                                              # +1 pre-summed wide row
MLP_DIMS = [D_IN] + HIDDEN_UNITS                               # [64, 32, 16]

TB_MAX = 8192   # max batch-tile width (lanes); multiple of 128


def _round_up(x, m):
    return ((x + m - 1) // m) * m


def _cdiv(a, b):
    return (a + b - 1) // b


def _batch_tiling(batch):
    """Pick (tb, b_pad).

    tb is a multiple of 128 that exactly divides b_pad, capped at TB_MAX.
    Once the padded batch exceeds one 128-lane tile we force an even number of
    grid steps so the "parallel" grid axis shards evenly across both v7x
    TensorCores (no-op on v5e/v6e).  Extra padding on top of round_up(B, 128)
    is bounded by < steps*128 columns (< ~2% at large B) — no 2x padding cliff.
    """
    b128 = _round_up(max(batch, 1), 128)
    steps = _cdiv(b128, TB_MAX)
    if b128 >= 256:
        steps = max(steps, 2)
        if steps % 2:
            steps += 1
    tb = _round_up(_cdiv(b128, steps), 128)
    return tb, steps * tb


# ----------------------------- Pallas kernel ---------------------------------
def _widedeep_kernel(x_ref, w1_ref, b1_ref, w2_ref, b2_ref, w3_ref, b3_ref,
                     out_ref):
    """Fused deep MLP + wide add + sigmoid, batch on the lane axis.

    x_ref : (D_ROWS, TB) bf16   rows 0..D_IN-1 = deep features,
                                row  D_IN      = pre-summed wide term
    w1/b1 : (H1, D_IN) f32, (H1, 1) f32
    w2/b2 : (H2, H1)   f32, (H2, 1) f32
    w3/b3 : (H2, 1)    f32, (1, 1)  f32     -- last_layer_deep
    out   : (1, TB)    f32
    """
    # Slab streamed bf16; compute in f32 (portable dot dtype, f32 accumulation).
    xd   = x_ref[0:D_IN, :].astype(jnp.float32)          # (D_IN, TB)
    wide = x_ref[D_IN:D_ROWS, :].astype(jnp.float32)     # (1, TB), pre-summed

    # Deep MLP (Dropout is identity at inference).
    h = jnp.dot(w1_ref[...], xd, preferred_element_type=jnp.float32) + b1_ref[...]
    h = jnp.maximum(h, 0.0)
    h = jnp.dot(w2_ref[...], h, preferred_element_type=jnp.float32) + b2_ref[...]
    h = jnp.maximum(h, 0.0)

    # Last Linear (H2 -> 1): VPU multiply + sublane reduce (avoid a 1-lane matmul).
    deep = jnp.sum(h * w3_ref[...], axis=0, keepdims=True) + b3_ref[...]   # (1, TB)

    out_ref[...] = jax.nn.sigmoid(deep + wide)


def widedeep_mlp_pallas(x_t, w1t, b1, w2t, b2, w3, b3, tb):
    """x_t: (D_ROWS, B_pad) bf16, B_pad an exact multiple of tb."""
    d_rows, b_pad = x_t.shape
    assert d_rows == D_ROWS and b_pad % tb == 0
    const = lambda i: (0, 0)     # resident weights: never re-DMA'd across steps

    # Default double-buffering is sufficient: per grid step the kernel is
    # MXU-push bound, not DMA bound, so no deeper pipelining of the slab.
    return pl.pallas_call(
        _widedeep_kernel,
        out_shape=jax.ShapeDtypeStruct((1, b_pad), jnp.float32),
        grid=(b_pad // tb,),
        in_specs=[
            pl.BlockSpec((D_ROWS, tb), lambda i: (0, i)),   # streamed feature slab
            pl.BlockSpec(w1t.shape, const),
            pl.BlockSpec(b1.shape, const),
            pl.BlockSpec(w2t.shape, const),
            pl.BlockSpec(b2.shape, const),
            pl.BlockSpec(w3.shape, const),
            pl.BlockSpec(b3.shape, const),
        ],
        out_specs=pl.BlockSpec((1, tb), lambda i: (0, i)),  # lane-dense output
        compiler_params=pltpu.CompilerParams(
            dimension_semantics=("parallel",),              # megacore on v7x
            vmem_limit_bytes=32 * 1024 * 1024),             # safe vs v7x 64 MiB
    )(x_t, w1t, b1, w2t, b2, w3, b3)


# ----------------------------- plain-JAX glue --------------------------------
@jax.jit
def widedeep_forward(params, token_ids, mh_ids, oh_ids):
    bf16 = jnp.bfloat16

    # Build the feature slab directly TRANSPOSED (features, batch) in bf16 from
    # transposed (tiny) tables: no (B, D) f32 slab / full-slab transpose+cast.
    deep_rows = []

    # Token EmbeddingBag (frozen pretrained, mode='mean'): (32, B)
    tok_T = params["word_emb"].T.astype(bf16)                         # (32, VOCAB)
    deep_rows.append(jnp.mean(tok_T[:, token_ids], axis=2))

    wide_parts = []
    for k in range(len(MULTIHOT_IDX)):
        emb_T = params["mh_emb"][k].T.astype(bf16)                    # (8, dims)
        deep_rows.append(jnp.mean(emb_T[:, mh_ids[k]], axis=2))       # (8, B)
        wide_parts.append(jnp.sum(params["mh_wide"][k].T[:, mh_ids[k]], axis=2))
    for k in range(len(ONEHOT_IDX)):
        emb_T = params["oh_emb"][k].T.astype(bf16)                    # (8, dims)
        deep_rows.append(emb_T[:, oh_ids[k]])                         # (8, B)
        wide_parts.append(params["oh_wide"][k].T[:, oh_ids[k]])       # (1, B)

    # Pre-reduce the 4 wide columns in f32; append as one extra slab row.
    wide_row = jnp.sum(jnp.concatenate(wide_parts, axis=0), axis=0,
                       keepdims=True)                                 # (1, B) f32

    slab_t = jnp.concatenate(deep_rows + [wide_row.astype(bf16)], axis=0)  # (65, B)
    B = slab_t.shape[1]

    tb, b_pad = _batch_tiling(B)
    if b_pad != B:
        slab_t = jnp.pad(slab_t, ((0, 0), (0, b_pad - B)))

    # Deep MLP weights stay f32 (tiny, VMEM-resident across grid steps).
    w1t = params["w1"].T                                              # (32, 64)
    w2t = params["w2"].T                                              # (16, 32)
    b1, b2 = params["b1"], params["b2"]                               # (32,1), (16,1)
    w3, b3 = params["w3"], params["b3"]                               # (16,1), (1,1)

    out = widedeep_mlp_pallas(slab_t, w1t, b1, w2t, b2, w3, b3, tb)   # (1, B_pad)
    return out[0, :B].reshape(B, 1)


# ----------------------------- param init ------------------------------------
def init_params(key):
    keys = iter(jax.random.split(key, 32))
    p = {}

    # frozen pretrained word embeddings
    p["word_emb"] = jax.random.normal(next(keys), (VOCAB, WORD_EMB_DIM),
                                      jnp.float32)

    # deep field embeddings: nn.init.normal_(w, 0, num_embeddings)
    p["mh_emb"] = [jax.random.normal(next(keys), (FIELD_DIMS[i], EMB_LENGTH),
                                     jnp.float32) * FIELD_DIMS[i]
                   for i in MULTIHOT_IDX]
    p["oh_emb"] = [jax.random.normal(next(keys), (FIELD_DIMS[i], EMB_LENGTH),
                                     jnp.float32) * FIELD_DIMS[i]
                   for i in ONEHOT_IDX]

    wide_std = (MLP_DIMS[-1] + sum(FIELD_DIMS[1:])) ** (-0.5)

    # wide (dim-1) field embeddings
    p["mh_wide"] = [jax.random.normal(next(keys), (FIELD_DIMS[i], 1),
                                      jnp.float32) * wide_std
                    for i in MULTIHOT_IDX]
    p["oh_wide"] = [jax.random.normal(next(keys), (FIELD_DIMS[i], 1),
                                      jnp.float32) * wide_std
                    for i in ONEHOT_IDX]

    # deep MLP weights (deterministic small-normal init)
    d0, d1, d2 = MLP_DIMS
    p["w1"] = jax.random.normal(next(keys), (d0, d1), jnp.float32) * 0.05
    p["b1"] = jnp.zeros((d1, 1), jnp.float32)
    p["w2"] = jax.random.normal(next(keys), (d1, d2), jnp.float32) * 0.05
    p["b2"] = jnp.zeros((d2, 1), jnp.float32)

    # last_layer_deep: Linear(hidden_units[-1], 1), weight ~ normal(0, wide_std)
    p["w3"] = jax.random.normal(next(keys), (d2, 1), jnp.float32) * wide_std
    p["b3"] = jnp.zeros((1, 1), jnp.float32)
    return p


# ----------------------------- main -------------------------------------------
if __name__ == "__main__":
    key = jax.random.PRNGKey(0)
    params = init_params(key)

    B = 8            # batch
    L_TOK = 6        # tokens per sample (equal-length bags)
    MH_LENS = [4, 3] # ids per multihot bag

    k_in = jax.random.split(jax.random.PRNGKey(0), 8)
    token_ids = jax.random.randint(k_in[0], (B, L_TOK), 0, VOCAB, jnp.int32)
    mh_ids = [
        jax.random.randint(k_in[1 + j], (B, MH_LENS[j]), 0,
                           FIELD_DIMS[MULTIHOT_IDX[j]], jnp.int32)
        for j in range(len(MULTIHOT_IDX))
    ]
    oh_ids = [
        jax.random.randint(k_in[4 + j], (B,), 0,
                           FIELD_DIMS[ONEHOT_IDX[j]], jnp.int32)
        for j in range(len(ONEHOT_IDX))
    ]

    out = widedeep_forward(params, token_ids, mh_ids, oh_ids)
    out = jax.block_until_ready(out)

    assert out.shape == (B, 1), out.shape
    assert bool(jnp.all(jnp.isfinite(out))), "non-finite output"
    assert bool(jnp.all((out >= 0.0) & (out <= 1.0))), "sigmoid out of range"
    print("KERNEL_OK")
</pallas_src>

<mosaic_0001>
module attributes {stable_mosaic.version = 11 : i64} {
  func.func @_widedeep_kernel(%arg0: i32, %arg1: memref<65x128xbf16, #tpu.memory_space<vmem>>, %arg2: memref<32x64xf32, #tpu.memory_space<vmem>>, %arg3: memref<32x1xf32, #tpu.memory_space<vmem>>, %arg4: memref<16x32xf32, #tpu.memory_space<vmem>>, %arg5: memref<16x1xf32, #tpu.memory_space<vmem>>, %arg6: memref<16x1xf32, #tpu.memory_space<vmem>>, %arg7: memref<1x1xf32, #tpu.memory_space<vmem>>, %arg8: memref<1x128xf32, #tpu.memory_space<vmem>>) attributes {dimension_semantics = [#tpu.dimension_semantics<parallel>], iteration_bounds = array<i64: 1>, scalar_prefetch = 0 : i64, scratch_operands = 0 : i64, tpu.core_type = #tpu.core_type<tc>, window_params = [{transform_indices = @transform_0, window_bounds = array<i64: 65, 128>}, {pipeline_mode = #tpu.pipeline_mode<synchronous>, transform_indices = @transform_1, window_bounds = array<i64: 32, 64>}, {pipeline_mode = #tpu.pipeline_mode<synchronous>, transform_indices = @transform_2, window_bounds = array<i64: 32, 1>}, {pipeline_mode = #tpu.pipeline_mode<synchronous>, transform_indices = @transform_3, window_bounds = array<i64: 16, 32>}, {pipeline_mode = #tpu.pipeline_mode<synchronous>, transform_indices = @transform_4, window_bounds = array<i64: 16, 1>}, {pipeline_mode = #tpu.pipeline_mode<synchronous>, transform_indices = @transform_5, window_bounds = array<i64: 16, 1>}, {pipeline_mode = #tpu.pipeline_mode<synchronous>, transform_indices = @transform_6, window_bounds = array<i64: 1, 1>}, {transform_indices = @transform_7, window_bounds = array<i64: 1, 128>}]} {
    %c0 = arith.constant 0 : index
    %c0_0 = arith.constant 0 : index
    %0 = vector.load %arg1[%c0, %c0_0] : memref<65x128xbf16, #tpu.memory_space<vmem>>, vector<64x128xbf16>
    %1 = arith.extf %0 : vector<64x128xbf16> to vector<64x128xf32>
    %c64 = arith.constant 64 : index
    %c0_1 = arith.constant 0 : index
    %2 = vector.load %arg1[%c64, %c0_1] : memref<65x128xbf16, #tpu.memory_space<vmem>>, vector<1x128xbf16>
    %3 = arith.extf %2 : vector<1x128xbf16> to vector<1x128xf32>
    %c0_2 = arith.constant 0 : index
    %c0_3 = arith.constant 0 : index
    %4 = vector.load %arg2[%c0_2, %c0_3] : memref<32x64xf32, #tpu.memory_space<vmem>>, vector<32x64xf32>
    %cst = arith.constant dense<0.000000e+00> : vector<32x128xf32>
    %5 = tpu.matmul %4, %1, %cst {dimension_numbers = #tpu.dot_dimension_numbers<[1], [0], [0], [1], [0, 0, 1, 1], [], []>} : vector<32x64xf32>, vector<64x128xf32>, vector<32x128xf32> -> vector<32x128xf32>
    %c0_4 = arith.constant 0 : index
    %c0_5 = arith.constant 0 : index
    %6 = vector.load %arg3[%c0_4, %c0_5] : memref<32x1xf32, #tpu.memory_space<vmem>>, vector<32x1xf32>
    %7 = vector.broadcast %6 : vector<32x1xf32> to vector<32x128xf32>
    %8 = arith.addf %5, %7 : vector<32x128xf32>
    %cst_6 = arith.constant 0.000000e+00 : f32
    %9 = vector.broadcast %cst_6 : f32 to vector<32x128xf32>
    %10 = arith.maximumf %8, %9 : vector<32x128xf32>
    %c0_7 = arith.constant 0 : index
    %c0_8 = arith.constant 0 : index
    %11 = vector.load %arg4[%c0_7, %c0_8] : memref<16x32xf32, #tpu.memory_space<vmem>>, vector<16x32xf32>
    %cst_9 = arith.constant dense<0.000000e+00> : vector<16x128xf32>
    %12 = tpu.matmul %11, %10, %cst_9 {dimension_numbers = #tpu.dot_dimension_numbers<[1], [0], [0], [1], [0, 0, 1, 1], [], []>} : vector<16x32xf32>, vector<32x128xf32>, vector<16x128xf32> -> vector<16x128xf32>
    %c0_10 = arith.constant 0 : index
    %c0_11 = arith.constant 0 : index
    %13 = vector.load %arg5[%c0_10, %c0_11] : memref<16x1xf32, #tpu.memory_space<vmem>>, vector<16x1xf32>
    %14 = vector.broadcast %13 : vector<16x1xf32> to vector<16x128xf32>
    %15 = arith.addf %12, %14 : vector<16x128xf32>
    %cst_12 = arith.constant 0.000000e+00 : f32
    %16 = vector.broadcast %cst_12 : f32 to vector<16x128xf32>
    %17 = arith.maximumf %15, %16 : vector<16x128xf32>
    %c0_13 = arith.constant 0 : index
    %c0_14 = arith.constant 0 : index
    %18 = vector.load %arg6[%c0_13, %c0_14] : memref<16x1xf32, #tpu.memory_space<vmem>>, vector<16x1xf32>
    %19 = vector.broadcast %18 : vector<16x1xf32> to vector<16x128xf32>
    %20 = arith.mulf %17, %19 : vector<16x128xf32>
    %cst_15 = arith.constant dense<0.000000e+00> : vector<128xf32>
    %21 = vector.multi_reduction <add>, %20, %cst_15 [0] : vector<16x128xf32> to vector<128xf32>
    %22 = vector.shape_cast %21 : vector<128xf32> to vector<1x128xf32>
    %c0_16 = arith.constant 0 : index
    %c0_17 = arith.constant 0 : index
    %23 = vector.load %arg7[%c0_16, %c0_17] : memref<1x1xf32, #tpu.memory_space<vmem>>, vector<1x1xf32>
    %24 = vector.broadcast %23 : vector<1x1xf32> to vector<1x128xf32>
    %25 = arith.addf %22, %24 : vector<1x128xf32>
    %26 = arith.addf %25, %3 : vector<1x128xf32>
    %27 = arith.negf %26 : vector<1x128xf32>
    %28 = math.exp %27 : vector<1x128xf32>
    %cst_18 = arith.constant 1.000000e+00 : f32
    %29 = vector.broadcast %cst_18 : f32 to vector<1x128xf32>
    %30 = arith.addf %29, %28 : vector<1x128xf32>
    %31 = arith.divf %29, %30 : vector<1x128xf32>
    %c0_19 = arith.constant 0 : index
    %c0_20 = arith.constant 0 : index
    %32 = vector.load %arg8[%c0_19, %c0_20] : memref<1x128xf32, #tpu.memory_space<vmem>>, vector<1x128xf32>
    tpu.vector_store %arg8[%c0_19, %c0_20], %31 {strides = array<i32>} : memref<1x128xf32, #tpu.memory_space<vmem>>, vector<1x128xf32>,
    return
  }
  func.func @transform_0(%arg0: i32) -> (i32, i32) {
    %c0_i32 = arith.constant 0 : i32
    %c0_i32_0 = arith.constant 0 : i32
    return %c0_i32, %arg0 : i32, i32
  }
  func.func @transform_1(%arg0: i32) -> (i32, i32) {
    %c0_i32 = arith.constant 0 : i32
    %c0_i32_0 = arith.constant 0 : i32
    %c0_i32_1 = arith.constant 0 : i32
    return %c0_i32, %c0_i32_0 : i32, i32
  }
  func.func @transform_2(%arg0: i32) -> (i32, i32) {
    %c0_i32 = arith.constant 0 : i32
    %c0_i32_0 = arith.constant 0 : i32
    %c0_i32_1 = arith.constant 0 : i32
    return %c0_i32, %c0_i32_0 : i32, i32
  }
  func.func @transform_3(%arg0: i32) -> (i32, i32) {
    %c0_i32 = arith.constant 0 : i32
    %c0_i32_0 = arith.constant 0 : i32
    %c0_i32_1 = arith.constant 0 : i32
    return %c0_i32, %c0_i32_0 : i32, i32
  }
  func.func @transform_4(%arg0: i32) -> (i32, i32) {
    %c0_i32 = arith.constant 0 : i32
    %c0_i32_0 = arith.constant 0 : i32
    %c0_i32_1 = arith.constant 0 : i32
    return %c0_i32, %c0_i32_0 : i32, i32
  }
  func.func @transform_5(%arg0: i32) -> (i32, i32) {
    %c0_i32 = arith.constant 0 : i32
    %c0_i32_0 = arith.constant 0 : i32
    %c0_i32_1 = arith.constant 0 : i32
    return %c0_i32, %c0_i32_0 : i32, i32
  }
  func.func @transform_6(%arg0: i32) -> (i32, i32) {
    %c0_i32 = arith.constant 0 : i32
    %c0_i32_0 = arith.constant 0 : i32
    %c0_i32_1 = arith.constant 0 : i32
    return %c0_i32, %c0_i32_0 : i32, i32
  }
  func.func @transform_7(%arg0: i32) -> (i32, i32) {
    %c0_i32 = arith.constant 0 : i32
    %c0_i32_0 = arith.constant 0 : i32
    return %c0_i32, %arg0 : i32, i32
  }
}

</mosaic_0001>

<bundles_post_ra>
// kernel: widedeep_forward.1
= control target key start
LH: loop header
LB: loop body
LE: loop exit
PB: predicated region body
PF: predicated region fallthrough
CT: control target
= control target key end

     0   :  { %vm74_vm0 = vcmask 523264   ;;  %v426_v2 = vmov 0   ;;  %vm190_vm1 = vcmask 261120   ;;  %v301_v51 = vlaneseq  ;;  %s536_s0 = inlined_call_operand.vmem [shape: bf16[65,128], index: 0, kind: input, shape index: {}]   ;;  %s537_s1 = inlined_call_operand.vmem [shape: f32[32,64], index: 1, kind: input, shape index: {}]   ;;  %s538_s6 = inlined_call_operand.<no memory space> [shape: f32[1,1], index: 6, kind: input, shape index: {}]   ;;  %s539_s2 = inlined_call_operand.vmem [shape: f32[32,1], index: 2, kind: input, shape index: {}]   ;;  %s540_s4 = inlined_call_operand.vmem [shape: f32[16,1], index: 4, kind: input, shape index: {}]   ;;  %s541_s5 = inlined_call_operand.vmem [shape: f32[16,1], index: 5, kind: input, shape index: {}]   ;;  %s542_s3 = inlined_call_operand.vmem [shape: f32[16,32], index: 3, kind: input, shape index: {}]   ;;  %s543_s7 = inlined_call_operand.vmem [shape: f32[1,128], index: 7, kind: output, shape index: {}]  }
   0x1   :  { %v326_v0 = vld [vmem:[%s536_s0] sm:$0xff]   ;;  %v341_v1 = vld [vmem:[%s536_s0 + $0x8] sm:$0xff]   ;;  %420 = vset.pattern.permute.xlu0 %v426_v2  ;;  %421 = vset.pattern.permute.xlu1 %v426_v2  ;;  %v12_v3 = vstv %s538_s6  ;;  %v52_v6 = vld [vmem:[%s539_s2 + $0x10] sm:$0xff] }
   0x2   :  { %396 = vmatprep.subr.bf16.mxu0 %v326_v0  ;;  %v46_v4 = vld [vmem:[%s537_s1] sm:$0xff]  ;;  %13 = vst [vmem:[#allocation2] sm:$0x1] %v12_v3  ;;  %v342_v7 = vld [vmem:[%s536_s0 + $0x10] sm:$0xff]   ;;  %66 = vperm.xlu1 %421, %v52_v6   ;;  %v51_v8 = vld [vmem:[%s539_s2 + $0x8] sm:$0xff]  ;;  %v302_v54 = vshrl.u32 %v301_v51, 7 }
   0x3   :  { %398 = vmatpush3.bf16.msra.mxu0 %v326_v0  ;;  %378 = vmatprep.mubr.msk.f32.mxu0 %vm74_vm0, %v46_v4  ;;  %v50_v5 = vld [vmem:[%s539_s2] sm:$0xff]  ;;  %v53_v9 = vld [vmem:[%s539_s2 + $0x18] sm:$0xff]  ;;  %v179_v12 = vld [vmem:[%s540_s4 + $0x8] sm:$0xff] }
   0x4   :  { %400 = vmatprep.subr.bf16.mxu0 %v341_v1  ;;  %56 = vperm.xlu0 %420, %v50_v5   ;;  %v343_v10 = vld [vmem:[%s536_s0 + $0x18] sm:$0xff]   ;;  %v178_v11 = vld [vmem:[%s540_s4] sm:$0xff]  ;;  %v275_v14 = vld [vmem:[%s541_s5 + $0x8] sm:$0xff]  ;;  %v303_v57 = vsub.s32 0, %v302_v54 }
   0x5   :  { %v274_v13 = vld [vmem:[%s541_s5] sm:$0xff]  ;;  %v47_v15 = vld [vmem:[%s537_s1 + $0x8] sm:$0xff]  ;;  %v48_v16 = vld [vmem:[%s537_s1 + $0x10] sm:$0xff] }
   0x6   :  { %71 = vperm.xlu1 %421, %v53_v9   ;;  %v49_v18 = vld [vmem:[%s537_s1 + $0x18] sm:$0xff]  ;;  %v176_v19 = vld [vmem:[%s542_s3] sm:$0xff]  ;;  %v177_v38 = vld [vmem:[%s542_s3 + $0x8] sm:$0xff] }
   0x7   :  { %402 = vmatpush3.bf16.msra.mxu0 %v341_v1  ;;  %392 = vmatprep.mubr.msk.f32.mxu1 %vm190_vm1, %v176_v19  ;;  %v44_v59 = vld [vmem:[%s536_s0 + $0x20] sm:$0x1] }
   0x8   :  { %404 = vmatprep.subr.bf16.mxu0 %v342_v7  ;;  %61 = vperm.xlu0 %420, %v51_v8   ;;  %v45_v62 = vunpack.c.l.bf16 %v44_v59 }
   0x9   :  { %v295_v17 = vld [vmem:[#allocation2] sm:$0x1] }
   0xa   :  { %187 = vperm.xlu1 %421, %v179_v12  }
   0xb   :  { %406 = vmatpush3.bf16.msra.mxu0 %v342_v7 }
   0xc   :  { %408 = vmatprep.subr.bf16.mxu0 %v343_v10  ;;  %182 = vperm.xlu0 %420, %v178_v11  }
   0xe   :  { %283 = vperm.xlu1 %421, %v275_v14  }
   0xf   :  { %410 = vmatpush3.bf16.msra.mxu0 %v343_v10 }
  0x10   :  { %278 = vperm.xlu0 %420, %v274_v13  }
  0x12   :  { %379 = vmatmul.mubr.msk.f32.vlgmr.msra.gmra.mrb[0].mxu0 %vm74_vm0, %v47_v15 }
  0x13   :  { %381 = vmatprep.mubr.msk.f32.mxu0 %vm74_vm0, %v48_v16 }
  0x14   :  { %298 = vperm.xlu0 %420, %v295_v17  }
  0x16   :  { %382 = vmatmul.mubr.msk.f32.gmra.mrb[2].mxu0 %vm74_vm0, %v49_v18 }
  0x81   :  { %v67_v21 = vpop.permute.xlu1 %66 }
  0x83   :  { %v57_v20 = vpop.permute.xlu0 %56 }
  0x85   :  { %v72_v28 = vpop.permute.xlu1 %71 }
  0x87   :  { %v62_v22 = vpop.permute.xlu0 %61 }
  0x89   :  { %v188_v39 = vpop.permute.xlu1 %187 }
  0x8b   :  { %v183_v40 = vpop.permute.xlu0 %182 }
  0x8d   :  { %v284_v46 = vpop.permute.xlu1 %283 }
  0x8f   :  { %v279_v48 = vpop.permute.xlu0 %278 }
  0x93   :  { %v299_v60 = vpop.permute.xlu0 %298 }
  0x94   :  { %v304_v63 = vrot.slane %v299_v60, %v303_v57 }
  0xe5   :  { %v380_v23 = vpop.f32.mrb[0].mxu0 }
  0xe6   :  { %v159_v24 = vadd.f32 %v380_v23, %v62_v22  ;;  %v153_v25 = vpop.f32.mrb[1].mxu0 }
  0xe7   :  { %v154_v26 = vadd.f32 %v153_v25, %v57_v20 }
  0xe8   :  { %v173_v27 = vmax.f32 %v159_v24, 0.0 }
  0xe9   :  { %v172_v29 = vmax.f32 %v154_v26, 0.0  ;;  %v383_v30 = vpop.f32.mrb[2].mxu0 }
  0xea   :  { %v169_v31 = vadd.f32 %v383_v30, %v72_v28  ;;  %v163_v32 = vpop.f32.mrb[3].mxu0 }
  0xeb   :  { %v164_v33 = vadd.f32 %v163_v32, %v67_v21  ;;  %v411_v34 = vpack.c.bf16 %v173_v27, %v172_v29 }
  0xec   :  { %v175_v35 = vmax.f32 %v169_v31, 0.0 }
  0xed   :  { %v174_v36 = vmax.f32 %v164_v33, 0.0  ;;  %412 = vmatprep.subr.bf16.mxu1 %v411_v34 }
  0xee   :  { %414 = vmatpush3.bf16.msra.mxu1 %v411_v34 }
  0xef   :  { %v415_v37 = vpack.c.bf16 %v175_v35, %v174_v36 }
  0xf1   :  { %416 = vmatprep.subr.bf16.mxu1 %v415_v37 }
  0xf2   :  { %418 = vmatpush3.bf16.msra.mxu1 %v415_v37 }
  0xf5   :  { %393 = vmatmul.mubr.msk.f32.vlgmr.msra.gmra.mrb[0].mxu1 %vm190_vm1, %v177_v38 }
 0x1c8   :  { %v394_v41 = vpop.f32.mrb[0].mxu1 }
 0x1c9   :  { %v269_v42 = vadd.f32 %v394_v41, %v188_v39  ;;  %v263_v43 = vpop.f32.mrb[1].mxu1 }
 0x1ca   :  { %v264_v44 = vadd.f32 %v263_v43, %v183_v40 }
 0x1cb   :  { %v273_v45 = vmax.f32 %v269_v42, 0.0 }
 0x1cc   :  { %v272_v47 = vmax.f32 %v264_v44, 0.0 }
 0x1cd   :  { %v287_v49 = vmul.f32 %v284_v46, %v273_v45 }
 0x1ce   :  { %v286_v50 = vmul.f32 %v279_v48, %v272_v47 }
 0x1d0   :  { %v288_v52 = vadd.f32 %v287_v49, %v286_v50 }
 0x1d2   :  { %v289_v53 = vrot.slane %v288_v52, 4 }
 0x1d4   :  { %v290_v55 = vadd.f32 %v289_v53, %v288_v52 }
 0x1d6   :  { %v291_v56 = vrot.slane %v290_v55, 2 }
 0x1d8   :  { %v292_v58 = vadd.f32 %v291_v56, %v290_v55 }
 0x1da   :  { %v293_v61 = vrot.slane %v292_v58, 1 }
 0x1dc   :  { %v294_v0 = vadd.f32 %v293_v61, %v292_v58 }
 0x1de   :  { %v305_v1 = vadd.f32 %v304_v63, %v294_v0 }
 0x1e0   :  { %v306_v2 = vadd.f32 %v305_v1, %v45_v62 }
 0x1e2   :  { %v324_v3 = vmul.f32 -1.442695, %v306_v2 }
 0x1e4   :  { %422 = vpow2.f32 %v324_v3 }
 0x1ee   :  { %v423_v4 = vpop.eup %422 }
 0x1ef   :  { %v310_v5 = vadd.f32 1.0, %v423_v4 }
 0x1f1   :  { %424 = vrcp.f32 %v310_v5 }
 0x1fb   :  { %v425_v6 = vpop.eup %424 }
 0x1fc   :  { %313 = vst [vmem:[%s543_s7] sm:$0x1] %v425_v6 }

</bundles_post_ra>
